<compile_context>
chip_gen: v5e
topology: v5e:2x2
jax: 0.10.0
libtpu: 0.0.40
codegen_flags: <defaults>
</compile_context>

<pallas_src>
import math

import jax
import jax.numpy as jnp
from jax.experimental import pallas as pl
from jax.experimental.pallas import tpu as pltpu


def _cdiv(a, b):
    return (a + b - 1) // b


def _round_up(x, m):
    return _cdiv(x, m) * m


# ---------------------------------------------------------------------------
# Kernels
# ---------------------------------------------------------------------------
def _noisy_linear_train_kernel(x_ref, w_mu_ref, w_sigma_ref, eps_in_ref, b_ref, out_ref):
    """y = x @ mu^T + eps_out * ((x * eps_in) @ sigma^T) + (b_mu + b_sigma * b_eps).

    Uses weight_epsilon = outer(eps_out, eps_in), so the full epsilon matrix is never
    materialized: two MXU matmuls against VMEM-resident mu/sigma slabs plus a tiny
    row-broadcast VPU multiply; accumulation in f32.

    x_ref      : (TB, IN)   compute dtype (f32 or bf16)
    w_mu_ref   : (IN, OUT)  compute dtype  (weight_mu^T, zero-padded, lane-dense)
    w_sigma_ref: (IN, OUT)  compute dtype  (weight_sigma^T)
    eps_in_ref : (1, IN)    compute dtype
    b_ref      : (4, OUT)   f32  rows = [bias_mu ; bias_sigma ; bias_epsilon ; eps_out]
    out_ref    : (TB, OUT)  f32
    """
    x = x_ref[...]
    y_mu = jnp.dot(x, w_mu_ref[...], preferred_element_type=jnp.float32)
    y_sig = jnp.dot(x * eps_in_ref[...], w_sigma_ref[...],
                    preferred_element_type=jnp.float32)
    b = b_ref[...]
    bias = b[0:1, :] + b[1:2, :] * b[2:3, :]
    out_ref[...] = y_mu + y_sig * b[3:4, :] + bias
    # NOTE: for very large, MXU-bound batches a single-matmul form (materialize
    # mu + sigma*eps once into VMEM scratch) halves MXU flops; below the memory
    # roofline (the common RL regime) this two-matmul form is strictly cheaper.


def _noisy_linear_eval_kernel(x_ref, w_mu_ref, b_mu_ref, out_ref):
    """Eval mode: y = x @ mu^T + bias_mu. Only the mu slab / bias_mu row are DMA'd."""
    out_ref[...] = (
        jnp.dot(x_ref[...], w_mu_ref[...], preferred_element_type=jnp.float32)
        + b_mu_ref[...])


# ---------------------------------------------------------------------------
# Parameter / noise construction (mirrors reset_parameters / reset_noise)
# ---------------------------------------------------------------------------
def init_params(key, in_features, out_features, std_init=0.4):
    kw, kb = jax.random.split(key)
    mu_range = 1.0 / math.sqrt(in_features)
    return dict(
        weight_mu=jax.random.uniform(kw, (out_features, in_features), jnp.float32,
                                     -mu_range, mu_range),
        weight_sigma=jnp.full((out_features, in_features),
                              std_init / math.sqrt(in_features), jnp.float32),
        bias_mu=jax.random.uniform(kb, (out_features,), jnp.float32,
                                   -mu_range, mu_range),
        bias_sigma=jnp.full((out_features,),
                            std_init / math.sqrt(out_features), jnp.float32),
    )


def _scale_noise(key, size):
    x = jax.random.normal(key, (size,), jnp.float32)
    return jnp.sign(x) * jnp.sqrt(jnp.abs(x))


def reset_noise(key, in_features, out_features):
    """Factorised Gaussian noise, exactly like NoisyLinear.reset_noise().

    Keeps the factor vectors (eps_in / eps_out) so the kernel can exploit the rank-1
    structure of weight_epsilon; the full weight_epsilon matrix is returned only for
    the pure-JAX reference check.
    """
    k_in, k_out, k_b = jax.random.split(key, 3)
    eps_in = _scale_noise(k_in, in_features)
    eps_out = _scale_noise(k_out, out_features)
    return dict(
        eps_in=eps_in,
        eps_out=eps_out,
        weight_epsilon=jnp.outer(eps_out, eps_in),
        bias_epsilon=_scale_noise(k_b, out_features),
    )


def pack_noisy_linear(params, noise, in_features, out_features, *,
                      param_dtype=jnp.float32):
    """Pad + transpose parameters once (layout plumbing, outside the forward path).

    param_dtype=jnp.bfloat16 halves weight HBM/VMEM bytes and feeds the bf16-native
    MXUs on v6e/v7x; accumulation stays f32 inside the kernel either way.
    """
    IN = _round_up(in_features, 128)
    OUT = _round_up(out_features, 128)

    def pad_wt(w):      # (out, in) -> (IN, OUT): transposed, zero-padded, lane-dense
        return jnp.pad(w.T.astype(param_dtype),
                       ((0, IN - in_features), (0, OUT - out_features)))

    def pad_row(v, width, dtype):   # (n,) -> (1, width)
        return jnp.pad(v.astype(dtype)[None, :], ((0, 0), (0, width - v.shape[0])))

    b_pack = jnp.concatenate(
        [pad_row(params["bias_mu"], OUT, jnp.float32),
         pad_row(params["bias_sigma"], OUT, jnp.float32),
         pad_row(noise["bias_epsilon"], OUT, jnp.float32),
         pad_row(noise["eps_out"], OUT, jnp.float32)], axis=0)        # (4, OUT)

    return dict(
        w_mu_t=pad_wt(params["weight_mu"]),                 # (IN, OUT)
        w_sigma_t=pad_wt(params["weight_sigma"]),           # (IN, OUT)
        eps_in=pad_row(noise["eps_in"], IN, param_dtype),   # (1, IN)
        b_pack=b_pack,                                      # (4, OUT) training rows
        b_mu=b_pack[0:1, :],                                # (1, OUT) eval-only bias
        out_features=out_features,
    )


# ---------------------------------------------------------------------------
# Forward
# ---------------------------------------------------------------------------
def _choose_batch_tiling(batch, batch_tile, min_grid):
    """Balanced batch tiles; >= min_grid grid steps whenever the batch allows it."""
    n_tiles = max(_cdiv(batch, batch_tile), min_grid, 1)
    tb = min(_round_up(_cdiv(batch, n_tiles), 8), _round_up(batch_tile, 8))
    n_tiles = _cdiv(batch, tb)
    return tb, n_tiles * tb, n_tiles


def noisy_linear_forward(x, packed, *, training=True, batch_tile=256, min_grid=2):
    """NoisyLinear forward on packed parameters (see pack_noisy_linear)."""
    w_mu_t = packed["w_mu_t"]
    IN, OUT = w_mu_t.shape
    cdtype = w_mu_t.dtype
    out_features = packed["out_features"]

    B = x.shape[0]
    TB, BP, n_tiles = _choose_batch_tiling(B, batch_tile, min_grid)

    # Pad / cast only when actually needed (keep activations pre-padded to (BP, IN)
    # in `cdtype` upstream to make this a no-op on the hot path).
    if x.dtype != cdtype:
        x = x.astype(cdtype)
    pad_b, pad_f = BP - x.shape[0], IN - x.shape[1]
    if pad_b or pad_f:
        x = jnp.pad(x, ((0, pad_b), (0, pad_f)))

    x_spec = pl.BlockSpec((TB, IN), lambda i: (i, 0))
    out_spec = pl.BlockSpec((TB, OUT), lambda i: (i, 0))

    def resident(shape):   # constant index_map -> fetched once, stays VMEM-resident
        return pl.BlockSpec(shape, lambda i: (0, 0))

    itemsize = jnp.dtype(cdtype).itemsize
    if training:
        kernel = _noisy_linear_train_kernel
        in_specs = [x_spec,
                    resident((IN, OUT)),      # weight_mu^T
                    resident((IN, OUT)),      # weight_sigma^T
                    resident((1, IN)),        # eps_in row (rank-1 noise factor)
                    resident((4, OUT))]       # bias_mu / bias_sigma / bias_eps / eps_out
        args = (x, packed["w_mu_t"], packed["w_sigma_t"],
                packed["eps_in"], packed["b_pack"])
        resident_bytes = 2 * IN * OUT * itemsize + 8 * IN * itemsize + 8 * OUT * 4
    else:
        kernel = _noisy_linear_eval_kernel
        in_specs = [x_spec,
                    resident((IN, OUT)),      # weight_mu^T only
                    resident((1, OUT))]       # bias_mu only
        args = (x, packed["w_mu_t"], packed["b_mu"])
        resident_bytes = IN * OUT * itemsize + 8 * OUT * 4

    # Explicit scoped-VMEM budget: x/out tiles + resident blocks, counted twice to be
    # safe under default double-buffering, plus headroom. Covers v5e's 16 MiB default
    # scoped limit; capped at v7x's 64 MiB physical VMEM per TensorCore.
    streamed_bytes = TB * IN * itemsize + TB * OUT * 4
    vmem_limit = int(min(max(2 * (resident_bytes + streamed_bytes) + (4 << 20),
                             16 << 20),
                         64 << 20))

    out = pl.pallas_call(
        kernel,
        out_shape=jax.ShapeDtypeStruct((BP, OUT), jnp.float32),
        grid_spec=pltpu.PrefetchScalarGridSpec(
            num_scalar_prefetch=0,
            grid=(n_tiles,),
            in_specs=in_specs,
            out_specs=out_spec,
        ),
        compiler_params=pltpu.CompilerParams(
            # Batch tiles are independent -> v7x's two TensorCores split the grid
            # (no effect on single-core v5e/v6e).
            dimension_semantics=("parallel",),
            vmem_limit_bytes=vmem_limit,
        ),
    )(*args)

    return out[:B, :out_features]


# ---------------------------------------------------------------------------
# Pure-JAX reference (mirrors the PyTorch forward verbatim)
# ---------------------------------------------------------------------------
def reference_forward(x, params, noise, training=True):
    if training:
        weight = params["weight_mu"] + params["weight_sigma"] * noise["weight_epsilon"]
        bias = params["bias_mu"] + params["bias_sigma"] * noise["bias_epsilon"]
    else:
        weight = params["weight_mu"]
        bias = params["bias_mu"]
    return x @ weight.T + bias


if __name__ == "__main__":
    key = jax.random.PRNGKey(0)
    k_params, k_noise, k_x, k_x2 = jax.random.split(key, 4)

    # --- Config 1: small shapes, single batch tile ---------------------------------
    B, IN_F, OUT_F = 2, 16, 4
    params = init_params(k_params, IN_F, OUT_F, std_init=0.4)
    noise = reset_noise(k_noise, IN_F, OUT_F)
    packed = pack_noisy_linear(params, noise, IN_F, OUT_F)
    x = jax.random.normal(k_x, (B, IN_F), jnp.float32)

    out_train = jax.block_until_ready(noisy_linear_forward(x, packed, training=True))
    ref_train = reference_forward(x, params, noise, training=True)
    assert out_train.shape == (B, OUT_F)
    assert jnp.allclose(out_train, ref_train, atol=3e-5, rtol=3e-5), \
        "training-mode mismatch vs JAX reference"

    out_eval = jax.block_until_ready(noisy_linear_forward(x, packed, training=False))
    ref_eval = reference_forward(x, params, noise, training=False)
    assert jnp.allclose(out_eval, ref_eval, atol=3e-5, rtol=3e-5), \
        "eval-mode mismatch vs JAX reference"

    # --- Config 2: multi-tile grid (2 batch tiles -> both v7x cores get work),
    #     non-multiple-of-8/128 sizes to exercise the padding paths ------------------
    B2, IN_F2, OUT_F2 = 20, 40, 24
    p2 = init_params(k_params, IN_F2, OUT_F2, std_init=0.4)
    n2 = reset_noise(k_noise, IN_F2, OUT_F2)
    pk2 = pack_noisy_linear(p2, n2, IN_F2, OUT_F2)
    x2 = jax.random.normal(k_x2, (B2, IN_F2), jnp.float32)
    o2 = jax.block_until_ready(noisy_linear_forward(x2, pk2, training=True))
    r2 = reference_forward(x2, p2, n2, training=True)
    assert o2.shape == (B2, OUT_F2)
    assert jnp.allclose(o2, r2, atol=3e-5, rtol=3e-5), \
        "multi-tile training-mode mismatch vs JAX reference"

    # --- bf16 weight/activation packing (v6e/v7x MXU-native; f32 accumulation) ------
    pk_bf16 = pack_noisy_linear(params, noise, IN_F, OUT_F, param_dtype=jnp.bfloat16)
    out_bf16 = jax.block_until_ready(noisy_linear_forward(x, pk_bf16, training=True))
    assert jnp.allclose(out_bf16, ref_train, atol=5e-2, rtol=5e-2), \
        "bf16-packed training-mode deviates too far from f32 reference"

    print("KERNEL_OK")
</pallas_src>

<mosaic_0001>
module attributes {stable_mosaic.version = 11 : i64} {
  func.func @_noisy_linear_train_kernel(%arg0: i32, %arg1: memref<8x128xf32, #tpu.memory_space<vmem>>, %arg2: memref<128x128xf32, #tpu.memory_space<vmem>>, %arg3: memref<128x128xf32, #tpu.memory_space<vmem>>, %arg4: memref<1x128xf32, #tpu.memory_space<vmem>>, %arg5: memref<4x128xf32, #tpu.memory_space<vmem>>, %arg6: memref<8x128xf32, #tpu.memory_space<vmem>>) attributes {dimension_semantics = [#tpu.dimension_semantics<parallel>], iteration_bounds = array<i64: 1>, scalar_prefetch = 0 : i64, scratch_operands = 0 : i64, tpu.core_type = #tpu.core_type<tc>, window_params = [{transform_indices = @transform_0, window_bounds = array<i64: 8, 128>}, {pipeline_mode = #tpu.pipeline_mode<synchronous>, transform_indices = @transform_1, window_bounds = array<i64: 128, 128>}, {pipeline_mode = #tpu.pipeline_mode<synchronous>, transform_indices = @transform_2, window_bounds = array<i64: 128, 128>}, {pipeline_mode = #tpu.pipeline_mode<synchronous>, transform_indices = @transform_3, window_bounds = array<i64: 1, 128>}, {pipeline_mode = #tpu.pipeline_mode<synchronous>, transform_indices = @transform_4, window_bounds = array<i64: 4, 128>}, {transform_indices = @transform_5, window_bounds = array<i64: 8, 128>}]} {
    %c0 = arith.constant 0 : index
    %c0_0 = arith.constant 0 : index
    %0 = vector.load %arg1[%c0, %c0_0] : memref<8x128xf32, #tpu.memory_space<vmem>>, vector<8x128xf32>
    %c0_1 = arith.constant 0 : index
    %c0_2 = arith.constant 0 : index
    %1 = vector.load %arg2[%c0_1, %c0_2] : memref<128x128xf32, #tpu.memory_space<vmem>>, vector<128x128xf32>
    %cst = arith.constant dense<0.000000e+00> : vector<8x128xf32>
    %2 = tpu.matmul %0, %1, %cst {dimension_numbers = #tpu.dot_dimension_numbers<[1], [0], [0], [1], [0, 0, 1, 1], [], []>} : vector<8x128xf32>, vector<128x128xf32>, vector<8x128xf32> -> vector<8x128xf32>
    %c0_3 = arith.constant 0 : index
    %c0_4 = arith.constant 0 : index
    %3 = vector.load %arg4[%c0_3, %c0_4] : memref<1x128xf32, #tpu.memory_space<vmem>>, vector<1x128xf32>
    %4 = vector.broadcast %3 : vector<1x128xf32> to vector<8x128xf32>
    %5 = arith.mulf %0, %4 : vector<8x128xf32>
    %c0_5 = arith.constant 0 : index
    %c0_6 = arith.constant 0 : index
    %6 = vector.load %arg3[%c0_5, %c0_6] : memref<128x128xf32, #tpu.memory_space<vmem>>, vector<128x128xf32>
    %cst_7 = arith.constant dense<0.000000e+00> : vector<8x128xf32>
    %7 = tpu.matmul %5, %6, %cst_7 {dimension_numbers = #tpu.dot_dimension_numbers<[1], [0], [0], [1], [0, 0, 1, 1], [], []>} : vector<8x128xf32>, vector<128x128xf32>, vector<8x128xf32> -> vector<8x128xf32>
    %c0_8 = arith.constant 0 : index
    %c0_9 = arith.constant 0 : index
    %8 = vector.load %arg5[%c0_8, %c0_9] : memref<4x128xf32, #tpu.memory_space<vmem>>, vector<4x128xf32>
    %9 = vector.extract_strided_slice %8 {offsets = [0, 0], sizes = [1, 128], strides = [1, 1]} : vector<4x128xf32> to vector<1x128xf32>
    %10 = vector.extract_strided_slice %8 {offsets = [1, 0], sizes = [1, 128], strides = [1, 1]} : vector<4x128xf32> to vector<1x128xf32>
    %11 = vector.extract_strided_slice %8 {offsets = [2, 0], sizes = [1, 128], strides = [1, 1]} : vector<4x128xf32> to vector<1x128xf32>
    %12 = arith.mulf %10, %11 : vector<1x128xf32>
    %13 = arith.addf %9, %12 : vector<1x128xf32>
    %14 = vector.extract_strided_slice %8 {offsets = [3, 0], sizes = [1, 128], strides = [1, 1]} : vector<4x128xf32> to vector<1x128xf32>
    %15 = vector.broadcast %14 : vector<1x128xf32> to vector<8x128xf32>
    %16 = arith.mulf %7, %15 : vector<8x128xf32>
    %17 = arith.addf %2, %16 : vector<8x128xf32>
    %18 = vector.broadcast %13 : vector<1x128xf32> to vector<8x128xf32>
    %19 = arith.addf %17, %18 : vector<8x128xf32>
    %c0_10 = arith.constant 0 : index
    %c0_11 = arith.constant 0 : index
    %20 = vector.load %arg6[%c0_10, %c0_11] : memref<8x128xf32, #tpu.memory_space<vmem>>, vector<8x128xf32>
    tpu.vector_store %arg6[%c0_10, %c0_11], %19 {strides = array<i32>} : memref<8x128xf32, #tpu.memory_space<vmem>>, vector<8x128xf32>,
    return
  }
  func.func @transform_0(%arg0: i32) -> (i32, i32) {
    %c0_i32 = arith.constant 0 : i32
    %c0_i32_0 = arith.constant 0 : i32
    return %arg0, %c0_i32 : i32, i32
  }
  func.func @transform_1(%arg0: i32) -> (i32, i32) {
    %c0_i32 = arith.constant 0 : i32
    %c0_i32_0 = arith.constant 0 : i32
    %c0_i32_1 = arith.constant 0 : i32
    return %c0_i32, %c0_i32_0 : i32, i32
  }
  func.func @transform_2(%arg0: i32) -> (i32, i32) {
    %c0_i32 = arith.constant 0 : i32
    %c0_i32_0 = arith.constant 0 : i32
    %c0_i32_1 = arith.constant 0 : i32
    return %c0_i32, %c0_i32_0 : i32, i32
  }
  func.func @transform_3(%arg0: i32) -> (i32, i32) {
    %c0_i32 = arith.constant 0 : i32
    %c0_i32_0 = arith.constant 0 : i32
    %c0_i32_1 = arith.constant 0 : i32
    return %c0_i32, %c0_i32_0 : i32, i32
  }
  func.func @transform_4(%arg0: i32) -> (i32, i32) {
    %c0_i32 = arith.constant 0 : i32
    %c0_i32_0 = arith.constant 0 : i32
    %c0_i32_1 = arith.constant 0 : i32
    return %c0_i32, %c0_i32_0 : i32, i32
  }
  func.func @transform_5(%arg0: i32) -> (i32, i32) {
    %c0_i32 = arith.constant 0 : i32
    %c0_i32_0 = arith.constant 0 : i32
    return %arg0, %c0_i32 : i32, i32
  }
}

</mosaic_0001>

<bundles_post_ra>
// kernel: tpu_custom_call.1
= control target key start
LH: loop header
LB: loop body
LE: loop exit
PB: predicated region body
PF: predicated region fallthrough
CT: control target
= control target key end

     0   :  { %10 = vsyncpa [#allocation3], 0  ;;  %s382_s0 = inlined_call_operand.hbm [shape: f32[8,128], index: 0, kind: input, shape index: {}]   ;;  %s383_s1 = inlined_call_operand.hbm [shape: f32[128,128], index: 1, kind: input, shape index: {}]   ;;  %s384_s2 = inlined_call_operand.hbm [shape: f32[128,128], index: 2, kind: input, shape index: {}]   ;;  %s385_s3 = inlined_call_operand.vmem [shape: f32[1,128], index: 3, kind: input, shape index: {}]   ;;  %s386_s4 = inlined_call_operand.hbm [shape: f32[4,128], index: 4, kind: input, shape index: {}]   ;;  %s387_s5 = inlined_call_operand.hbm [shape: f32[8,128], index: 5, kind: output, shape index: {}]  }
   0x1   :  { %11 = vsyncpa [#allocation6], 0 }
   0x2   :  { %12 = vsyncpa [#allocation9], 0  ;;  %s29_s20 = sshll.u32 %s383_s1, 4  ;;  %s30_s20 = int_to_ptr.hbm [resolvable:$true] %s29_s20 }
   0x3   :  { %13 = vsyncpa [#allocation4], 0  ;;  %s327_s21 = smov [#allocation5]   ;;  %s19_s25 = sshll.u32 %s382_s0, 4  ;;  %s20_s25 = int_to_ptr.hbm [resolvable:$true] %s19_s25 }
   0x4   :  { %s31_s22 = sshll.u32 %s327_s21, 4  ;;  %s328_s26 = smov 128   ;;  %s32_s22 = int_to_ptr.vmem [resolvable:$true] %s31_s22 }
   0x5   :  { %s329_s27 = smov 8   ;;  %s330_s28 = smov [#allocation2]  }
   0x6   :  { %37 = dma.hbm_to_vmem [thread:$0]  %s30_s20, 2048, %s32_s22, [#allocation6], %s328_s26, %s328_s26, %s329_s27  }
   0x7   :  { %s21_s29 = sshll.u32 %s330_s28, 4  ;;  %s42_s7 = sshll.u32 %s384_s2, 4  ;;  %s22_s29 = int_to_ptr.vmem [resolvable:$true] %s21_s29  ;;  %s43_s7 = int_to_ptr.hbm [resolvable:$true] %s42_s7 }
   0x8   :  { %24 = dma.hbm_to_vmem [thread:$0]  %s20_s25, 128, %s22_s29, [#allocation3]  }
   0x9   :  { %s58_s9 = sshll.u32 %s386_s4, 4  ;;  %s331_s10 = smov [#allocation7]   ;;  %s59_s9 = int_to_ptr.hbm [resolvable:$true] %s58_s9 }
   0xa   :  { %s44_s11 = sshll.u32 %s331_s10, 4  ;;  %s332_s0 = smov [#allocation8]   ;;  %s45_s11 = int_to_ptr.vmem [resolvable:$true] %s44_s11 }
   0xb   :  { %50 = dma.hbm_to_vmem [thread:$0]  %s43_s7, 2048, %s45_s11, [#allocation6], %s328_s26, %s328_s26, %s329_s27  }
   0xc   :  { %s60_s12 = sshll.u32 %s332_s0, 4  ;;  %s61_s12 = int_to_ptr.vmem [resolvable:$true] %s60_s12 }
   0xd   :  { %63 = dma.hbm_to_vmem [thread:$0]  %s59_s9, 64, %s61_s12, [#allocation9]  }
   0xe   :  { %319 = dma.done.wait [#allocation3], 128  }
   0xf   :  { %320 = vsyncadd [#allocation3], 4294967168 }
  0x10   :  { %321 = dma.done.wait [#allocation6], 4096  }
  0x11   :  { %322 = vsyncadd [#allocation6], 4294963200 }
  0x12   :  { %323 = dma.done.wait [#allocation9], 64  }
  0x13   :  { %324 = vsyncadd [#allocation9], 4294967232  ;;  %v117_v0 = vld [vmem:[#allocation7 + $0x78] sm:$0xff]  ;;  %v116_v1 = vld [vmem:[#allocation7 + $0x70] sm:$0xff]  ;;  %s179_s16 = sshll.u32 %s387_s5, 4  ;;  %s180_s16 = int_to_ptr.hbm [resolvable:$true] %s179_s16 }
  0x14   :  { %v96_v2 = vld [vmem:[#allocation5 + $0x78] sm:$0xff]  ;;  %118 = vmatpush.msra.mxu0 %v117_v0  ;;  %v95_v3 = vld [vmem:[#allocation5 + $0x70] sm:$0xff]  ;;  %v115_v4 = vld [vmem:[#allocation7 + $0x68] sm:$0xff] }
  0x15   :  { %149 = vmatpush.msra.mxu1 %v96_v2  ;;  %v94_v5 = vld [vmem:[#allocation5 + $0x68] sm:$0xff]  ;;  %v114_v6 = vld [vmem:[#allocation7 + $0x60] sm:$0xff]  ;;  %v113_v8 = vld [vmem:[#allocation7 + $0x58] sm:$0xff] }
  0x16   :  { %119 = vmatpush.msra.mxu0 %v116_v1  ;;  %v93_v7 = vld [vmem:[#allocation5 + $0x60] sm:$0xff]  ;;  %v92_v9 = vld [vmem:[#allocation5 + $0x58] sm:$0xff]  ;;  %v112_v10 = vld [vmem:[#allocation7 + $0x50] sm:$0xff] }
  0x17   :  { %150 = vmatpush.msra.mxu1 %v95_v3  ;;  %v91_v11 = vld [vmem:[#allocation5 + $0x50] sm:$0xff]  ;;  %v111_v12 = vld [vmem:[#allocation7 + $0x48] sm:$0xff]  ;;  %v110_v14 = vld [vmem:[#allocation7 + $0x40] sm:$0xff] }
  0x18   :  { %120 = vmatpush.msra.mxu0 %v115_v4  ;;  %v90_v13 = vld [vmem:[#allocation5 + $0x48] sm:$0xff]  ;;  %v89_v15 = vld [vmem:[#allocation5 + $0x40] sm:$0xff]  ;;  %v109_v16 = vld [vmem:[#allocation7 + $0x38] sm:$0xff] }
  0x19   :  { %151 = vmatpush.msra.mxu1 %v94_v5  ;;  %v88_v17 = vld [vmem:[#allocation5 + $0x38] sm:$0xff]  ;;  %v108_v18 = vld [vmem:[#allocation7 + $0x30] sm:$0xff]  ;;  %v107_v20 = vld [vmem:[#allocation7 + $0x28] sm:$0xff] }
  0x1a   :  { %121 = vmatpush.msra.mxu0 %v114_v6  ;;  %v87_v19 = vld [vmem:[#allocation5 + $0x30] sm:$0xff]  ;;  %v86_v21 = vld [vmem:[#allocation5 + $0x28] sm:$0xff]  ;;  %v106_v22 = vld [vmem:[#allocation7 + $0x20] sm:$0xff] }
  0x1b   :  { %152 = vmatpush.msra.mxu1 %v93_v7  ;;  %v85_v23 = vld [vmem:[#allocation5 + $0x20] sm:$0xff]  ;;  %v105_v24 = vld [vmem:[#allocation7 + $0x18] sm:$0xff]  ;;  %v104_v26 = vld [vmem:[#allocation7 + $0x10] sm:$0xff] }
  0x1c   :  { %122 = vmatpush.msra.mxu0 %v113_v8  ;;  %v84_v25 = vld [vmem:[#allocation5 + $0x18] sm:$0xff]  ;;  %v83_v27 = vld [vmem:[#allocation5 + $0x10] sm:$0xff]  ;;  %v103_v30 = vld [vmem:[#allocation7 + $0x8] sm:$0xff] }
  0x1d   :  { %153 = vmatpush.msra.mxu1 %v92_v9  ;;  %v198_v28 = vld [vmem:[%s385_s3] ss:$0 sm:$0xff]  ;;  %v82_v31 = vld [vmem:[#allocation5 + $0x8] sm:$0xff]  ;;  %v102_v32 = vld [vmem:[#allocation7] sm:$0xff]  ;;  %s333_s3 = smov [#allocation10]  }
  0x1e   :  { %123 = vmatpush.msra.mxu0 %v112_v10  ;;  %v80_v29 = vld [vmem:[#allocation2] sm:$0xff]  ;;  %v81_v34 = vld [vmem:[#allocation5] sm:$0xff]  ;;  %s177_s13 = sshll.u32 %s333_s3, 4  ;;  %s178_s13 = int_to_ptr.vmem [resolvable:$true] %s177_s13 }
  0x1f   :  { %154 = vmatpush.msra.mxu1 %v91_v11  ;;  %v101_v33 = vmul.f32 %v198_v28, %v80_v29  ;;  %v138_v35 = vld [vmem:[#allocation8] sm:$0xf] }
  0x20   :  { %124 = vmatpush.msra.mxu0 %v111_v12  ;;  %v140_v36 = vrot.slane %v138_v35, 1  ;;  %v147_v39 = vperm.slane %v138_v35, 3 }
  0x21   :  { %155 = vmatpush.msra.mxu1 %v90_v13 }
  0x22   :  { %125 = vmatpush.msra.mxu0 %v110_v14  ;;  %v142_v37 = vmul.f32 %v140_v36, %v138_v35 }
  0x23   :  { %156 = vmatpush.msra.mxu1 %v89_v15 }
  0x24   :  { %126 = vmatpush.msra.mxu0 %v109_v16  ;;  %v144_v38 = vrot.slane %v142_v37, 1 }
  0x25   :  { %157 = vmatpush.msra.mxu1 %v88_v17 }
  0x26   :  { %127 = vmatpush.msra.mxu0 %v108_v18  ;;  %v146_v40 = vadd.f32 %v144_v38, %v138_v35 }
  0x27   :  { %158 = vmatpush.msra.mxu1 %v87_v19 }
  0x28   :  { %128 = vmatpush.msra.mxu0 %v107_v20  ;;  %v169_v44 = vperm.slane %v146_v40, 0 }
  0x29   :  { %159 = vmatpush.msra.mxu1 %v86_v21 }
  0x2a   :  { %129 = vmatpush.msra.mxu0 %v106_v22 }
  0x2b   :  { %160 = vmatpush.msra.mxu1 %v85_v23 }
  0x2c   :  { %130 = vmatpush.msra.mxu0 %v105_v24 }
  0x2d   :  { %161 = vmatpush.msra.mxu1 %v84_v25 }
  0x2e   :  { %131 = vmatpush.msra.mxu0 %v104_v26 }
  0x2f   :  { %162 = vmatpush.msra.mxu1 %v83_v27 }
  0x30   :  { %132 = vmatpush.msra.mxu0 %v103_v30 }
  0x31   :  { %163 = vmatpush.msra.mxu1 %v82_v31 }
  0x32   :  { %133 = vmatpush.msra.mxu0 %v102_v32 }
  0x33   :  { %164 = vmatpush.msra.mxu1 %v81_v34  ;;  %134 = vmatmul.f32.vlgmr.msra.gmra.mxu0 %v101_v33 }
  0x34   :  { %165 = vmatmul.f32.vlgmr.msra.gmra.mxu1 %v80_v29 }
  0xb0   :  { %v135_v41 = vpop.f32.mrf.mxu0 }
  0xb1   :  { %v166_v42 = vpop.f32.mrf.mxu1  ;;  %v148_v43 = vmul.f32 %v147_v39, %v135_v41 }
  0xb3   :  { %v167_v45 = vadd.f32 %v166_v42, %v148_v43 }
  0xb5   :  { %v170_v46 = vadd.f32 %v169_v44, %v167_v45 }
  0xb7   :  { %171 = vst [vmem:[#allocation10] sm:$0xff] %v170_v46 }
  0xb8   :  { %182 = dma.vmem_to_hbm [thread:$0]  %s178_s13, 128, %s180_s16, [#allocation4]  }
  0xb9   :  { %325 = dma.done.wait [#allocation4], 128  }
  0xba   :  { %326 = vsyncadd [#allocation4], 4294967168 }
  0xbb   :  { %187 = vsyncpa [#allocation3], 1 }
  0xbc   :  { %188 = vsyncpa [#allocation6], 1 }
  0xbd   :  { %189 = vsyncpa [#allocation9], 1 }
  0xbe   :  { %190 = vsyncpa [#allocation4], 1 }

</bundles_post_ra>
